<compile_context>
chip_gen: v5e
topology: v5e:2x2
jax: 0.10.0
libtpu: 0.0.40
codegen_flags: <defaults>
</compile_context>

<pallas_src>
import jax
import jax.numpy as jnp
from jax import lax
from jax.experimental import pallas as pl
from jax.experimental.pallas import tpu as pltpu


def _round_up(x, m):
    return (x + m - 1) // m * m


# ---------------------------------------------------------------------------
# Pallas kernel: one grid step per (batch tile, time chunk). The hidden state
# lives in the output block (block index constant across the time axis, so it
# stays VMEM-resident). Packed-sequence semantics reproduced by masking
# updates with (t < length[b]); whole chunks past a tile's longest sequence
# are skipped via the scalar-prefetched per-tile chunk count.
# ---------------------------------------------------------------------------
def _make_rnn_kernel(t_chunk, unroll):
    def kernel(nchunks_ref, lens_ref, p_ref, whh_ref, h_ref):
        bt = pl.program_id(0)                 # batch-tile index ("parallel")
        c = pl.program_id(1)                  # time-chunk index (innermost, "arbitrary")

        @pl.when(c == 0)
        def _init():
            h_ref[...] = jnp.zeros_like(h_ref)

        # Skip chunks entirely beyond this batch tile's longest sequence.
        @pl.when(c < nchunks_ref[bt])
        def _compute():
            # Hoisted once per chunk (not per step): lane-broadcast of lengths.
            lens = jnp.broadcast_to(lens_ref[...][:, :1], h_ref.shape)  # (b_tile, hid_p) i32
            whh = whh_ref[...]                                          # (hid_p, hid_p) bf16
            t0 = c * t_chunk

            def step(i, h):
                # Serial part only: h @ W_hh^T + P_t (input projection hoisted outside).
                p_t = p_ref[i].astype(jnp.float32)                      # (b_tile, hid_p)
                pre = jnp.dot(h.astype(jnp.bfloat16), whh,
                              preferred_element_type=jnp.float32) + p_t
                h_new = jnp.tanh(pre)                                   # f32 EUP
                # pack_padded_sequence: rows with length <= t keep their hidden state.
                return jnp.where(lens > (t0 + i), h_new, h)

            # Bounded unroll: enough scheduler visibility to overlap adjacent
            # matmul / tanh / select, without spilling at large tiles/chunks.
            h_ref[...] = lax.fori_loop(0, t_chunk, step, h_ref[...],
                                       unroll=unroll)

    return kernel


def rnn_forward(text, lengths, params, *, t_chunk=32, unroll=8, max_single_tile=256):
    """text: (seq_len, batch) int32, lengths: (batch,) int32 (sorted desc, >=1)."""
    emb_w = params["emb"]        # (vocab, emb_dim), row pad_idx zeroed
    wih_t = params["wih_t"]      # (emb_dim, hidden)  == W_ih.T
    whh_t = params["whh_t"]      # (hidden, hidden)   == W_hh.T
    b     = params["b"]          # (1, hidden)        == b_ih + b_hh
    fcw_t = params["fcw_t"]      # (hidden, out_dim)  == W_fc.T
    fcb   = params["fcb"]        # (1, out_dim)

    seq_len, batch = text.shape
    emb_dim = emb_w.shape[1]
    hidden = whh_t.shape[0]

    # ---- tiling -------------------------------------------------------------
    hid_p = _round_up(hidden, 128)                 # lane dim -> multiple of 128
    t_chunk = max(1, min(t_chunk, seq_len))
    unroll = max(1, min(unroll, t_chunk))
    seq_p = _round_up(seq_len, t_chunk)

    # bf16 sublane packing needs the 2nd-to-last block dim to be a multiple of 16.
    batch_p = _round_up(batch, 16)
    if batch_p > max_single_tile:
        n_bt = 2                                    # one maximal tile per v7x TensorCore
        batch_p = _round_up(batch_p, 2 * 16)
    else:
        n_bt = 1                                    # single maximal tile (fills MXU height)
    b_tile = batch_p // n_bt

    # ---- glue in plain XLA: embedding gather + hoisted input projection ----
    # Dropout is identity in eval mode. pack_padded_sequence requires lengths >= 1,
    # sorted descending (assumed, not checked). The projection is done in bf16 and
    # emitted directly in the padded (seq_p, batch_p, hid_p) bf16 layout.
    x = emb_w[text]                                              # (seq, batch, emb) f32
    x = jnp.pad(x, ((0, seq_p - seq_len), (0, batch_p - batch), (0, 0)))
    wih_pad = jnp.pad(wih_t, ((0, 0), (0, hid_p - hidden))).astype(jnp.bfloat16)
    b_pad = jnp.pad(b, ((0, 0), (0, hid_p - hidden)))            # zeros in padded cols
    p = jnp.dot(x.astype(jnp.bfloat16).reshape(seq_p * batch_p, emb_dim),
                wih_pad, preferred_element_type=jnp.float32)     # ONE large bf16 GEMM
    p = (p + b_pad).astype(jnp.bfloat16).reshape(seq_p, batch_p, hid_p)

    # Zero padding is exact: padded hidden columns of P and W_hh stay 0 so padded
    # hidden columns of h stay 0; padded batch rows have length 0 (never updated)
    # and are sliced off; padded timesteps are masked / chunk-skipped.
    whh_pad = jnp.pad(whh_t, ((0, hid_p - hidden),
                              (0, hid_p - hidden))).astype(jnp.bfloat16)

    lens_pad = jnp.pad(lengths.astype(jnp.int32), (0, batch_p - batch))
    lens_lane = jnp.broadcast_to(lens_pad[:, None], (batch_p, 128))   # small lane block

    # Per-batch-tile chunk count for dead-chunk skipping (lengths sorted desc ->
    # later tiles finish early). Scalar-prefetched into SMEM.
    max_len_tile = jnp.max(lens_pad.reshape(n_bt, b_tile), axis=1)
    nchunks = ((max_len_tile + t_chunk - 1) // t_chunk).astype(jnp.int32)

    grid = (n_bt, seq_p // t_chunk)                 # (batch tiles, time chunks)

    h_last = pl.pallas_call(
        _make_rnn_kernel(t_chunk, unroll),
        out_shape=jax.ShapeDtypeStruct((batch_p, hid_p), jnp.float32),
        grid_spec=pltpu.PrefetchScalarGridSpec(
            num_scalar_prefetch=1,                  # nchunks -> SMEM, visible to index_maps
            grid=grid,
            in_specs=[
                # lengths, lane block only (broadcast to hid_p inside the kernel)
                pl.BlockSpec((b_tile, 128), lambda bt, c, nck: (bt, 0)),
                # P chunk; index clamped to the last needed chunk so skipped chunks
                # re-use the previous block and issue no new DMA.
                pl.BlockSpec((t_chunk, b_tile, hid_p),
                             lambda bt, c, nck:
                             (jnp.maximum(jnp.minimum(c, nck[bt] - 1), 0), bt, 0)),
                # W_hh^T, grid-invariant
                pl.BlockSpec((hid_p, hid_p), lambda bt, c, nck: (0, 0)),
            ],
            # Output block index is constant across the time axis -> VMEM-resident;
            # it doubles as the carried hidden state (no scratch, no finalize copy).
            out_specs=pl.BlockSpec((b_tile, hid_p), lambda bt, c, nck: (bt, 0)),
        ),
        compiler_params=pltpu.CompilerParams(
            # batch tiles are independent (megacore-parallel on v7x);
            # the time axis carries the hidden state -> innermost "arbitrary".
            dimension_semantics=("parallel", "arbitrary")),
    )(nchunks, lens_lane, p, whh_pad)

    # Final Linear (and identity dropout) outside the kernel: one tiny matmul,
    # keeps the FC weights out of the per-timestep pipeline and VMEM.
    h = h_last[:batch, :hidden]
    return h @ fcw_t + fcb


# ---------------------------------------------------------------------------
# Pure-JAX f32 reference (same semantics as the PyTorch module) for a check.
# ---------------------------------------------------------------------------
def rnn_reference(text, lengths, params):
    x = params["emb"][text].astype(jnp.float32)
    seq_len, batch = text.shape
    hidden = params["whh_t"].shape[0]
    h = jnp.zeros((batch, hidden), jnp.float32)
    for t in range(seq_len):
        h_new = jnp.tanh(x[t] @ params["wih_t"] + h @ params["whh_t"] + params["b"])
        mask = (lengths > t)[:, None]
        h = jnp.where(mask, h_new, h)
    return h @ params["fcw_t"] + params["fcb"]


if __name__ == "__main__":
    # Small config consistent with the module's __init__.
    VOCAB, EMB, HID, OUT = 50, 32, 32, 4
    SEQ, BATCH, PAD_IDX = 8, 8, 0

    key = jax.random.PRNGKey(0)
    k = jax.random.split(key, 8)

    emb_w = 0.1 * jax.random.normal(k[0], (VOCAB, EMB), jnp.float32)
    emb_w = emb_w.at[PAD_IDX].set(0.0)                       # padding_idx row zeroed
    w_ih = 0.1 * jax.random.normal(k[1], (HID, EMB), jnp.float32)
    w_hh = 0.1 * jax.random.normal(k[2], (HID, HID), jnp.float32)
    b_ih = 0.1 * jax.random.normal(k[3], (HID,), jnp.float32)
    b_hh = 0.1 * jax.random.normal(k[4], (HID,), jnp.float32)
    fc_w = 0.1 * jax.random.normal(k[5], (OUT, HID), jnp.float32)
    fc_b = 0.1 * jax.random.normal(k[6], (OUT,), jnp.float32)

    params = dict(
        emb=emb_w,
        wih_t=w_ih.T,
        whh_t=w_hh.T,
        b=(b_ih + b_hh).reshape(1, HID),
        fcw_t=fc_w.T,
        fcb=fc_b.reshape(1, OUT),
    )

    # Sorted-descending lengths (pack_padded_sequence requirement, all >= 1) and
    # padded text.
    lengths = jnp.array([8, 8, 7, 6, 5, 3, 2, 1], dtype=jnp.int32)
    tok = jax.random.randint(k[7], (SEQ, BATCH), 1, VOCAB, dtype=jnp.int32)
    t_idx = jnp.arange(SEQ)[:, None]
    text = jnp.where(t_idx < lengths[None, :], tok, PAD_IDX)   # (seq, batch)

    out = rnn_forward(text, lengths, params)
    out = jax.block_until_ready(out)

    ref = rnn_reference(text, lengths, params)
    assert out.shape == (BATCH, OUT)
    # bf16 MXU operands with f32 accumulation -> loosened tolerance vs f32 ref.
    assert jnp.allclose(out, ref, atol=1e-2, rtol=1e-2), (out, ref)

    print("KERNEL_OK")
</pallas_src>

<mosaic_0001>
module attributes {stable_mosaic.version = 11 : i64} {
  func.func @kernel(%arg0: i32, %arg1: i32, %arg2: memref<1xi32, #tpu.memory_space<smem>>, %arg3: memref<16x128xi32, #tpu.memory_space<vmem>>, %arg4: memref<8x16x128xbf16, #tpu.memory_space<vmem>>, %arg5: memref<128x128xbf16, #tpu.memory_space<vmem>>, %arg6: memref<16x128xf32, #tpu.memory_space<vmem>>) attributes {dimension_semantics = [#tpu.dimension_semantics<parallel>, #tpu.dimension_semantics<arbitrary>], iteration_bounds = array<i64: 1, 1>, scalar_prefetch = 1 : i64, scratch_operands = 0 : i64, tpu.core_type = #tpu.core_type<tc>, window_params = [{transform_indices = @transform_0, window_bounds = array<i64: 16, 128>}, {transform_indices = @transform_1, window_bounds = array<i64: 8, 16, 128>}, {pipeline_mode = #tpu.pipeline_mode<synchronous>, transform_indices = @transform_2, window_bounds = array<i64: 128, 128>}, {transform_indices = @transform_3, window_bounds = array<i64: 16, 128>}]} {
    %c0_i32 = arith.constant 0 : i32
    %0 = arith.cmpi eq, %arg1, %c0_i32 : i32
    %1 = arith.extui %0 : i1 to i32
    %c0_i32_0 = arith.constant 0 : i32
    %2 = arith.cmpi ne, %1, %c0_i32_0 : i32
    scf.if %2 {
      %cst = arith.constant 0.000000e+00 : f32
      %8 = vector.broadcast %cst : f32 to vector<16x128xf32>
      %c0 = arith.constant 0 : index
      %c0_2 = arith.constant 0 : index
      %9 = vector.load %arg6[%c0, %c0_2] : memref<16x128xf32, #tpu.memory_space<vmem>>, vector<16x128xf32>
      tpu.vector_store %arg6[%c0, %c0_2], %8 {strides = array<i32>} : memref<16x128xf32, #tpu.memory_space<vmem>>, vector<16x128xf32>,
    } else {
    }
    %3 = arith.index_cast %arg0 : i32 to index
    %4 = memref.load %arg2[%3] : memref<1xi32, #tpu.memory_space<smem>>
    %5 = arith.cmpi slt, %arg1, %4 : i32
    %6 = arith.extui %5 : i1 to i32
    %c0_i32_1 = arith.constant 0 : i32
    %7 = arith.cmpi ne, %6, %c0_i32_1 : i32
    scf.if %7 {
      %c0 = arith.constant 0 : index
      %c0_2 = arith.constant 0 : index
      %8 = vector.load %arg3[%c0, %c0_2] : memref<16x128xi32, #tpu.memory_space<vmem>>, vector<16x128xi32>
      %9 = vector.extract_strided_slice %8 {offsets = [0, 0], sizes = [16, 1], strides = [1, 1]} : vector<16x128xi32> to vector<16x1xi32>
      %10 = vector.shape_cast %9 : vector<16x1xi32> to vector<16x1xi32>
      %11 = vector.broadcast %10 : vector<16x1xi32> to vector<16x128xi32>
      %c0_3 = arith.constant 0 : index
      %c0_4 = arith.constant 0 : index
      %12 = vector.load %arg5[%c0_3, %c0_4] : memref<128x128xbf16, #tpu.memory_space<vmem>>, vector<128x128xbf16>
      %c8_i32 = arith.constant 8 : i32
      %13 = arith.muli %arg1, %c8_i32 : i32
      %c0_5 = arith.constant 0 : index
      %c0_6 = arith.constant 0 : index
      %14 = vector.load %arg6[%c0_5, %c0_6] : memref<16x128xf32, #tpu.memory_space<vmem>>, vector<16x128xf32>
      %c0_i32_7 = arith.constant 0 : i32
      %15 = arith.index_cast %c0_i32_7 : i32 to index
      %c0_8 = arith.constant 0 : index
      %c0_9 = arith.constant 0 : index
      %16 = vector.load %arg4[%15, %c0_8, %c0_9] : memref<8x16x128xbf16, #tpu.memory_space<vmem>>, vector<1x16x128xbf16>
      %17 = vector.shape_cast %16 : vector<1x16x128xbf16> to vector<16x128xbf16>
      %18 = arith.extf %17 : vector<16x128xbf16> to vector<16x128xf32>
      %19 = arith.truncf %14 : vector<16x128xf32> to vector<16x128xbf16>
      %cst = arith.constant dense<0.000000e+00> : vector<16x128xf32>
      %20 = tpu.matmul %19, %12, %cst {dimension_numbers = #tpu.dot_dimension_numbers<[1], [0], [0], [1], [0, 0, 1, 1], [], []>} : vector<16x128xbf16>, vector<128x128xbf16>, vector<16x128xf32> -> vector<16x128xf32>
      %21 = arith.addf %20, %18 : vector<16x128xf32>
      %22 = math.tanh %21 : vector<16x128xf32>
      %23 = arith.addi %13, %c0_i32_7 : i32
      %24 = vector.broadcast %23 : i32 to vector<16x128xi32>
      %25 = arith.cmpi sgt, %11, %24 : vector<16x128xi32>
      %26 = arith.select %25, %22, %14 : vector<16x128xi1>, vector<16x128xf32>
      %c1_i32 = arith.constant 1 : i32
      %27 = arith.index_cast %c1_i32 : i32 to index
      %c0_10 = arith.constant 0 : index
      %c0_11 = arith.constant 0 : index
      %28 = vector.load %arg4[%27, %c0_10, %c0_11] : memref<8x16x128xbf16, #tpu.memory_space<vmem>>, vector<1x16x128xbf16>
      %29 = vector.shape_cast %28 : vector<1x16x128xbf16> to vector<16x128xbf16>
      %30 = arith.extf %29 : vector<16x128xbf16> to vector<16x128xf32>
      %31 = arith.truncf %26 : vector<16x128xf32> to vector<16x128xbf16>
      %cst_12 = arith.constant dense<0.000000e+00> : vector<16x128xf32>
      %32 = tpu.matmul %31, %12, %cst_12 {dimension_numbers = #tpu.dot_dimension_numbers<[1], [0], [0], [1], [0, 0, 1, 1], [], []>} : vector<16x128xbf16>, vector<128x128xbf16>, vector<16x128xf32> -> vector<16x128xf32>
      %33 = arith.addf %32, %30 : vector<16x128xf32>
      %34 = math.tanh %33 : vector<16x128xf32>
      %35 = arith.addi %13, %c1_i32 : i32
      %36 = vector.broadcast %35 : i32 to vector<16x128xi32>
      %37 = arith.cmpi sgt, %11, %36 : vector<16x128xi32>
      %38 = arith.select %37, %34, %26 : vector<16x128xi1>, vector<16x128xf32>
      %c2_i32 = arith.constant 2 : i32
      %39 = arith.index_cast %c2_i32 : i32 to index
      %c0_13 = arith.constant 0 : index
      %c0_14 = arith.constant 0 : index
      %40 = vector.load %arg4[%39, %c0_13, %c0_14] : memref<8x16x128xbf16, #tpu.memory_space<vmem>>, vector<1x16x128xbf16>
      %41 = vector.shape_cast %40 : vector<1x16x128xbf16> to vector<16x128xbf16>
      %42 = arith.extf %41 : vector<16x128xbf16> to vector<16x128xf32>
      %43 = arith.truncf %38 : vector<16x128xf32> to vector<16x128xbf16>
      %cst_15 = arith.constant dense<0.000000e+00> : vector<16x128xf32>
      %44 = tpu.matmul %43, %12, %cst_15 {dimension_numbers = #tpu.dot_dimension_numbers<[1], [0], [0], [1], [0, 0, 1, 1], [], []>} : vector<16x128xbf16>, vector<128x128xbf16>, vector<16x128xf32> -> vector<16x128xf32>
      %45 = arith.addf %44, %42 : vector<16x128xf32>
      %46 = math.tanh %45 : vector<16x128xf32>
      %47 = arith.addi %13, %c2_i32 : i32
      %48 = vector.broadcast %47 : i32 to vector<16x128xi32>
      %49 = arith.cmpi sgt, %11, %48 : vector<16x128xi32>
      %50 = arith.select %49, %46, %38 : vector<16x128xi1>, vector<16x128xf32>
      %c3_i32 = arith.constant 3 : i32
      %51 = arith.index_cast %c3_i32 : i32 to index
      %c0_16 = arith.constant 0 : index
      %c0_17 = arith.constant 0 : index
      %52 = vector.load %arg4[%51, %c0_16, %c0_17] : memref<8x16x128xbf16, #tpu.memory_space<vmem>>, vector<1x16x128xbf16>
      %53 = vector.shape_cast %52 : vector<1x16x128xbf16> to vector<16x128xbf16>
      %54 = arith.extf %53 : vector<16x128xbf16> to vector<16x128xf32>
      %55 = arith.truncf %50 : vector<16x128xf32> to vector<16x128xbf16>
      %cst_18 = arith.constant dense<0.000000e+00> : vector<16x128xf32>
      %56 = tpu.matmul %55, %12, %cst_18 {dimension_numbers = #tpu.dot_dimension_numbers<[1], [0], [0], [1], [0, 0, 1, 1], [], []>} : vector<16x128xbf16>, vector<128x128xbf16>, vector<16x128xf32> -> vector<16x128xf32>
      %57 = arith.addf %56, %54 : vector<16x128xf32>
      %58 = math.tanh %57 : vector<16x128xf32>
      %59 = arith.addi %13, %c3_i32 : i32
      %60 = vector.broadcast %59 : i32 to vector<16x128xi32>
      %61 = arith.cmpi sgt, %11, %60 : vector<16x128xi32>
      %62 = arith.select %61, %58, %50 : vector<16x128xi1>, vector<16x128xf32>
      %c4_i32 = arith.constant 4 : i32
      %63 = arith.index_cast %c4_i32 : i32 to index
      %c0_19 = arith.constant 0 : index
      %c0_20 = arith.constant 0 : index
      %64 = vector.load %arg4[%63, %c0_19, %c0_20] : memref<8x16x128xbf16, #tpu.memory_space<vmem>>, vector<1x16x128xbf16>
      %65 = vector.shape_cast %64 : vector<1x16x128xbf16> to vector<16x128xbf16>
      %66 = arith.extf %65 : vector<16x128xbf16> to vector<16x128xf32>
      %67 = arith.truncf %62 : vector<16x128xf32> to vector<16x128xbf16>
      %cst_21 = arith.constant dense<0.000000e+00> : vector<16x128xf32>
      %68 = tpu.matmul %67, %12, %cst_21 {dimension_numbers = #tpu.dot_dimension_numbers<[1], [0], [0], [1], [0, 0, 1, 1], [], []>} : vector<16x128xbf16>, vector<128x128xbf16>, vector<16x128xf32> -> vector<16x128xf32>
      %69 = arith.addf %68, %66 : vector<16x128xf32>
      %70 = math.tanh %69 : vector<16x128xf32>
      %71 = arith.addi %13, %c4_i32 : i32
      %72 = vector.broadcast %71 : i32 to vector<16x128xi32>
      %73 = arith.cmpi sgt, %11, %72 : vector<16x128xi32>
      %74 = arith.select %73, %70, %62 : vector<16x128xi1>, vector<16x128xf32>
      %c5_i32 = arith.constant 5 : i32
      %75 = arith.index_cast %c5_i32 : i32 to index
      %c0_22 = arith.constant 0 : index
      %c0_23 = arith.constant 0 : index
      %76 = vector.load %arg4[%75, %c0_22, %c0_23] : memref<8x16x128xbf16, #tpu.memory_space<vmem>>, vector<1x16x128xbf16>
      %77 = vector.shape_cast %76 : vector<1x16x128xbf16> to vector<16x128xbf16>
      %78 = arith.extf %77 : vector<16x128xbf16> to vector<16x128xf32>
      %79 = arith.truncf %74 : vector<16x128xf32> to vector<16x128xbf16>
      %cst_24 = arith.constant dense<0.000000e+00> : vector<16x128xf32>
      %80 = tpu.matmul %79, %12, %cst_24 {dimension_numbers = #tpu.dot_dimension_numbers<[1], [0], [0], [1], [0, 0, 1, 1], [], []>} : vector<16x128xbf16>, vector<128x128xbf16>, vector<16x128xf32> -> vector<16x128xf32>
      %81 = arith.addf %80, %78 : vector<16x128xf32>
      %82 = math.tanh %81 : vector<16x128xf32>
      %83 = arith.addi %13, %c5_i32 : i32
      %84 = vector.broadcast %83 : i32 to vector<16x128xi32>
      %85 = arith.cmpi sgt, %11, %84 : vector<16x128xi32>
      %86 = arith.select %85, %82, %74 : vector<16x128xi1>, vector<16x128xf32>
      %c6_i32 = arith.constant 6 : i32
      %87 = arith.index_cast %c6_i32 : i32 to index
      %c0_25 = arith.constant 0 : index
      %c0_26 = arith.constant 0 : index
      %88 = vector.load %arg4[%87, %c0_25, %c0_26] : memref<8x16x128xbf16, #tpu.memory_space<vmem>>, vector<1x16x128xbf16>
      %89 = vector.shape_cast %88 : vector<1x16x128xbf16> to vector<16x128xbf16>
      %90 = arith.extf %89 : vector<16x128xbf16> to vector<16x128xf32>
      %91 = arith.truncf %86 : vector<16x128xf32> to vector<16x128xbf16>
      %cst_27 = arith.constant dense<0.000000e+00> : vector<16x128xf32>
      %92 = tpu.matmul %91, %12, %cst_27 {dimension_numbers = #tpu.dot_dimension_numbers<[1], [0], [0], [1], [0, 0, 1, 1], [], []>} : vector<16x128xbf16>, vector<128x128xbf16>, vector<16x128xf32> -> vector<16x128xf32>
      %93 = arith.addf %92, %90 : vector<16x128xf32>
      %94 = math.tanh %93 : vector<16x128xf32>
      %95 = arith.addi %13, %c6_i32 : i32
      %96 = vector.broadcast %95 : i32 to vector<16x128xi32>
      %97 = arith.cmpi sgt, %11, %96 : vector<16x128xi32>
      %98 = arith.select %97, %94, %86 : vector<16x128xi1>, vector<16x128xf32>
      %c7_i32 = arith.constant 7 : i32
      %99 = arith.index_cast %c7_i32 : i32 to index
      %c0_28 = arith.constant 0 : index
      %c0_29 = arith.constant 0 : index
      %100 = vector.load %arg4[%99, %c0_28, %c0_29] : memref<8x16x128xbf16, #tpu.memory_space<vmem>>, vector<1x16x128xbf16>
      %101 = vector.shape_cast %100 : vector<1x16x128xbf16> to vector<16x128xbf16>
      %102 = arith.extf %101 : vector<16x128xbf16> to vector<16x128xf32>
      %103 = arith.truncf %98 : vector<16x128xf32> to vector<16x128xbf16>
      %cst_30 = arith.constant dense<0.000000e+00> : vector<16x128xf32>
      %104 = tpu.matmul %103, %12, %cst_30 {dimension_numbers = #tpu.dot_dimension_numbers<[1], [0], [0], [1], [0, 0, 1, 1], [], []>} : vector<16x128xbf16>, vector<128x128xbf16>, vector<16x128xf32> -> vector<16x128xf32>
      %105 = arith.addf %104, %102 : vector<16x128xf32>
      %106 = math.tanh %105 : vector<16x128xf32>
      %107 = arith.addi %13, %c7_i32 : i32
      %108 = vector.broadcast %107 : i32 to vector<16x128xi32>
      %109 = arith.cmpi sgt, %11, %108 : vector<16x128xi32>
      %110 = arith.select %109, %106, %98 : vector<16x128xi1>, vector<16x128xf32>
      %c8_i32_31 = arith.constant 8 : i32
      %c0_32 = arith.constant 0 : index
      %c0_33 = arith.constant 0 : index
      %111 = vector.load %arg6[%c0_32, %c0_33] : memref<16x128xf32, #tpu.memory_space<vmem>>, vector<16x128xf32>
      tpu.vector_store %arg6[%c0_32, %c0_33], %110 {strides = array<i32>} : memref<16x128xf32, #tpu.memory_space<vmem>>, vector<16x128xf32>,
    } else {
    }
    return
  }
  func.func @transform_0(%arg0: i32, %arg1: i32, %arg2: memref<1xi32, #tpu.memory_space<smem>>) -> (i32, i32) {
    %c0_i32 = arith.constant 0 : i32
    %c0_i32_0 = arith.constant 0 : i32
    return %arg0, %c0_i32 : i32, i32
  }
  func.func @transform_1(%arg0: i32, %arg1: i32, %arg2: memref<1xi32, #tpu.memory_space<smem>>) -> (i32, i32, i32) {
    %0 = arith.index_cast %arg0 : i32 to index
    %1 = memref.load %arg2[%0] : memref<1xi32, #tpu.memory_space<smem>>
    %c1_i32 = arith.constant 1 : i32
    %2 = arith.subi %1, %c1_i32 : i32
    %3 = arith.minsi %arg1, %2 : i32
    %c0_i32 = arith.constant 0 : i32
    %4 = arith.maxsi %3, %c0_i32 : i32
    %c0_i32_0 = arith.constant 0 : i32
    %c0_i32_1 = arith.constant 0 : i32
    return %4, %arg0, %c0_i32_0 : i32, i32, i32
  }
  func.func @transform_2(%arg0: i32, %arg1: i32, %arg2: memref<1xi32, #tpu.memory_space<smem>>) -> (i32, i32) {
    %c0_i32 = arith.constant 0 : i32
    %c0_i32_0 = arith.constant 0 : i32
    %c0_i32_1 = arith.constant 0 : i32
    return %c0_i32, %c0_i32_0 : i32, i32
  }
  func.func @transform_3(%arg0: i32, %arg1: i32, %arg2: memref<1xi32, #tpu.memory_space<smem>>) -> (i32, i32) {
    %c0_i32 = arith.constant 0 : i32
    %c0_i32_0 = arith.constant 0 : i32
    return %arg0, %c0_i32 : i32, i32
  }
}

</mosaic_0001>

<bundles_post_ra>
// kernel: tpu_custom_call.1
= control target key start
LH: loop header
LB: loop body
LE: loop exit
PB: predicated region body
PF: predicated region fallthrough
CT: control target
= control target key end

     0   :  { %10 = vsyncpa [#allocation5], 0  ;;  %s718_s0 = inlined_call_operand.<no memory space> [shape: s32[1], index: 0, kind: input, shape index: {}]   ;;  %s719_s1 = inlined_call_operand.hbm [shape: s32[16,128], index: 1, kind: input, shape index: {}]   ;;  %s720_s2 = inlined_call_operand.hbm [shape: bf16[8,16,128], index: 2, kind: input, shape index: {}]   ;;  %s721_s3 = inlined_call_operand.hbm [shape: bf16[128,128], index: 3, kind: input, shape index: {}]   ;;  %s722_s4 = inlined_call_operand.hbm [shape: f32[16,128], index: 4, kind: output, shape index: {}]  }
   0x1   :  { %11 = vsyncpa [#allocation8], 0  ;;  %s40_s17 = sshll.u32 %s720_s2, 4  ;;  %s41_s17 = int_to_ptr.hbm [resolvable:$true] %s40_s17 }
   0x2   :  { %12 = vsyncpa [#allocation6], 0  ;;  %s642_s18 = smov [#allocation7]   ;;  %s17_s22 = sshll.u32 %s719_s1, 4  ;;  %s18_s22 = int_to_ptr.hbm [resolvable:$true] %s17_s22 }
   0x3   :  { %s42_s19 = sshll.u32 %s642_s18, 4  ;;  %s643_s23 = smov 64   ;;  %s43_s19 = int_to_ptr.vmem [resolvable:$true] %s42_s19 }
   0x4   :  { %s644_s24 = smov 4   ;;  %s645_s25 = smov [#allocation4]  }
   0x5   :  { %48 = dma.hbm_to_vmem [thread:$0]  %s41_s17, 1024, %s43_s19, [#allocation8], %s643_s23, %s643_s23, %s644_s24  }
   0x6   :  { %s19_s26 = sshll.u32 %s645_s25, 4  ;;  %s646_s27 = smov 128   ;;  %s20_s26 = int_to_ptr.vmem [resolvable:$true] %s19_s26 }
   0x7   :  { %s647_s28 = smov 8   ;;  %s53_s30 = sshll.u32 %s721_s3, 4  ;;  %s54_s30 = int_to_ptr.hbm [resolvable:$true] %s53_s30 }
   0x8   :  { %25 = dma.hbm_to_vmem [thread:$0]  %s18_s22, 256, %s20_s26, [#allocation5], %s646_s27, %s646_s27, %s647_s28  }
   0x9   :  { %s648_s5 = smov [#allocation9]  }
   0xa   :  { %s55_s1 = sshll.u32 %s648_s5, 4  ;;  %s56_s1 = int_to_ptr.vmem [resolvable:$true] %s55_s1 }
   0xb   :  { %61 = dma.hbm_to_vmem [thread:$0]  %s54_s30, 1024, %s56_s1, [#allocation8], %s643_s23, %s643_s23, %s644_s24  }
   0xc   :  { %636 = dma.done.wait [#allocation5], 256  }
   0xd   :  { %637 = vsyncadd [#allocation5], 4294967040 }
   0xe   :  { %638 = dma.done.wait [#allocation8], 2048  }
   0xf   :  { %639 = vsyncadd [#allocation8], 4294965248  ;;  %v649_v0 = vmov 0.0   ;;  %p424_p0 = scmp.le.s32.totalorder %s718_s0, 0 }
  0x10   :  { %85 = vst [vmem:[#allocation10] sm:$0xff] %v649_v0 }
  0x11   :  { %86 = vst [vmem:[#allocation10 + $0x8] sm:$0xff] %v649_v0  ;;  %91 = sbr.rel (%p424_p0) target bundleno = 1245 (0x4dd), region = 33 }
  0x16   :  { %v464_v1 = vld [vmem:[#allocation9 + $0x38] sm:$0xff]  ;;  %v463_v2 = vld [vmem:[#allocation9 + $0x30] sm:$0xff]  ;;  %v650_v3 = vmov 0   ;;  %v462_v5 = vld [vmem:[#allocation9 + $0x28] sm:$0xff] }
  0x17   :  { %172 = vmatpush.bf16.msra.mxu0 %v464_v1  ;;  %507 = vset.pattern.permute.xlu0 %v650_v3  ;;  %v92_v4 = vld [vmem:[#allocation4] sm:$0xff]  ;;  %v93_v6 = vld [vmem:[#allocation4 + $0x8] sm:$0xff]  ;;  %v461_v7 = vld [vmem:[#allocation9 + $0x20] sm:$0xff] }
  0x18   :  { %199 = vmatpush.bf16.msra.mxu1 %v464_v1  ;;  %227 = vmatpush.bf16.msra.mxu2 %v464_v1  ;;  %v460_v8 = vld [vmem:[#allocation9 + $0x18] sm:$0xff]  ;;  %v459_v9 = vld [vmem:[#allocation9 + $0x10] sm:$0xff]  ;;  %v458_v10 = vld [vmem:[#allocation9 + $0x8] sm:$0xff] }
  0x19   :  { %95 = vperm.xlu0 %507, %v92_v4   ;;  %255 = vmatpush.bf16.msra.mxu3 %v464_v1  ;;  %v457_v11 = vld [vmem:[#allocation9] sm:$0xff]  ;;  %v118_v13 = vld [vmem:[#allocation10 + $0x8] sm:$0xff]  ;;  %v474_v41 = vld [vmem:[#allocation7 + $0x10] sm:$0xff]  }
  0x1a   :  { %v117_v12 = vld [vmem:[#allocation10] sm:$0xff]  ;;  %v470_v29 = vld [vmem:[#allocation7 + $0x8] sm:$0xff]   ;;  %v475_v43 = vunpack.c.l.bf16 %v474_v41  ;;  %v476_v45 = vunpack.c.h.bf16 %v474_v41  ;;  %v478_v53 = vld [vmem:[#allocation7 + $0x18] sm:$0xff]  }
  0x1b   :  { %173 = vmatpush.bf16.msra.mxu0 %v463_v2  ;;  %v123_v14 = vpack.c.bf16 %v118_v13, %v117_v12  ;;  %v466_v15 = vld [vmem:[#allocation7] sm:$0xff]   ;;  %v471_v31 = vunpack.c.l.bf16 %v470_v29  ;;  %v472_v33 = vunpack.c.h.bf16 %v470_v29  ;;  %v479_v55 = vunpack.c.l.bf16 %v478_v53 }
  0x1c   :  { %200 = vmatpush.bf16.msra.mxu1 %v463_v2  ;;  %228 = vmatpush.bf16.msra.mxu2 %v463_v2  ;;  %v467_v17 = vunpack.c.l.bf16 %v466_v15  ;;  %v468_v20 = vunpack.c.h.bf16 %v466_v15  ;;  %v480_v57 = vunpack.c.h.bf16 %v478_v53 }
  0x1d   :  { %256 = vmatpush.bf16.msra.mxu3 %v463_v2 }
  0x1f   :  { %174 = vmatpush.bf16.msra.mxu0 %v462_v5 }
  0x20   :  { %201 = vmatpush.bf16.msra.mxu1 %v462_v5  ;;  %229 = vmatpush.bf16.msra.mxu2 %v462_v5 }
  0x21   :  { %98 = vperm.xlu0 %507, %v93_v6   ;;  %257 = vmatpush.bf16.msra.mxu3 %v462_v5 }
  0x23   :  { %175 = vmatpush.bf16.msra.mxu0 %v461_v7 }
  0x24   :  { %202 = vmatpush.bf16.msra.mxu1 %v461_v7  ;;  %230 = vmatpush.bf16.msra.mxu2 %v461_v7 }
  0x25   :  { %258 = vmatpush.bf16.msra.mxu3 %v461_v7 }
  0x27   :  { %176 = vmatpush.bf16.msra.mxu0 %v460_v8 }
  0x28   :  { %203 = vmatpush.bf16.msra.mxu1 %v460_v8  ;;  %231 = vmatpush.bf16.msra.mxu2 %v460_v8 }
  0x29   :  { %259 = vmatpush.bf16.msra.mxu3 %v460_v8 }
  0x2b   :  { %177 = vmatpush.bf16.msra.mxu0 %v459_v9 }
  0x2c   :  { %204 = vmatpush.bf16.msra.mxu1 %v459_v9  ;;  %232 = vmatpush.bf16.msra.mxu2 %v459_v9 }
  0x2d   :  { %260 = vmatpush.bf16.msra.mxu3 %v459_v9 }
  0x2f   :  { %178 = vmatpush.bf16.msra.mxu0 %v458_v10 }
  0x30   :  { %205 = vmatpush.bf16.msra.mxu1 %v458_v10  ;;  %233 = vmatpush.bf16.msra.mxu2 %v458_v10 }
  0x31   :  { %261 = vmatpush.bf16.msra.mxu3 %v458_v10 }
  0x33   :  { %179 = vmatpush.bf16.msra.mxu0 %v457_v11 }
  0x34   :  { %206 = vmatpush.bf16.msra.mxu1 %v457_v11  ;;  %234 = vmatpush.bf16.msra.mxu2 %v457_v11 }
  0x35   :  { %262 = vmatpush.bf16.msra.mxu3 %v457_v11 }
  0x36   :  { %180 = vmatmul.bf16.vlgmr.msra.gmra.mxu0 %v123_v14 }
  0x37   :  { %283 = vmatpush.bf16.msrb.mxu0 %v464_v1 }
  0x38   :  { %311 = vmatpush.bf16.msrb.mxu1 %v464_v1  ;;  %339 = vmatpush.bf16.msrb.mxu2 %v464_v1 }
  0x39   :  { %367 = vmatpush.bf16.msrb.mxu3 %v464_v1  ;;  %v482_v1 = vld [vmem:[#allocation7 + $0x20] sm:$0xff]  }
  0x3a   :  { %v483_v3 = vunpack.c.l.bf16 %v482_v1 }
  0x3b   :  { %284 = vmatpush.bf16.msrb.mxu0 %v463_v2 }
  0x3c   :  { %312 = vmatpush.bf16.msrb.mxu1 %v463_v2  ;;  %340 = vmatpush.bf16.msrb.mxu2 %v463_v2 }
  0x3d   :  { %368 = vmatpush.bf16.msrb.mxu3 %v463_v2 }
  0x3f   :  { %285 = vmatpush.bf16.msrb.mxu0 %v462_v5 }
  0x40   :  { %313 = vmatpush.bf16.msrb.mxu1 %v462_v5  ;;  %341 = vmatpush.bf16.msrb.mxu2 %v462_v5 }
  0x41   :  { %369 = vmatpush.bf16.msrb.mxu3 %v462_v5  ;;  %v484_v5 = vunpack.c.h.bf16 %v482_v1 }
  0x43   :  { %286 = vmatpush.bf16.msrb.mxu0 %v461_v7 }
  0x44   :  { %314 = vmatpush.bf16.msrb.mxu1 %v461_v7  ;;  %342 = vmatpush.bf16.msrb.mxu2 %v461_v7 }
  0x45   :  { %370 = vmatpush.bf16.msrb.mxu3 %v461_v7 }
  0x47   :  { %287 = vmatpush.bf16.msrb.mxu0 %v460_v8 }
  0x48   :  { %315 = vmatpush.bf16.msrb.mxu1 %v460_v8  ;;  %343 = vmatpush.bf16.msrb.mxu2 %v460_v8 }
  0x49   :  { %371 = vmatpush.bf16.msrb.mxu3 %v460_v8 }
  0x4b   :  { %288 = vmatpush.bf16.msrb.mxu0 %v459_v9 }
  0x4c   :  { %316 = vmatpush.bf16.msrb.mxu1 %v459_v9  ;;  %344 = vmatpush.bf16.msrb.mxu2 %v459_v9 }
  0x4d   :  { %372 = vmatpush.bf16.msrb.mxu3 %v459_v9 }
  0x4f   :  { %289 = vmatpush.bf16.msrb.mxu0 %v458_v10 }
  0x50   :  { %317 = vmatpush.bf16.msrb.mxu1 %v458_v10  ;;  %345 = vmatpush.bf16.msrb.mxu2 %v458_v10 }
  0x51   :  { %373 = vmatpush.bf16.msrb.mxu3 %v458_v10 }
  0x53   :  { %290 = vmatpush.bf16.msrb.mxu0 %v457_v11 }
  0x54   :  { %318 = vmatpush.bf16.msrb.mxu1 %v457_v11  ;;  %346 = vmatpush.bf16.msrb.mxu2 %v457_v11 }
  0x55   :  { %374 = vmatpush.bf16.msrb.mxu3 %v457_v11 }
  0x8b   :  { %v692_v18 = vpop.permute.xlu0 %95 }
  0x8c   :  { %vm189_vm0 = vcmp.gt.s32.totalorder %v692_v18, 0  ;;  %vm217_vm2 = vcmp.gt.s32.totalorder %v692_v18, 1  ;;  %vm245_vm4 = vcmp.gt.s32.totalorder %v692_v18, 2  ;;  %vm273_vm6 = vcmp.gt.s32.totalorder %v692_v18, 3 }
  0x8d   :  { %vm301_vm8 = vcmp.gt.s32.totalorder %v692_v18, 4  ;;  %vm329_vm10 = vcmp.gt.s32.totalorder %v692_v18, 5  ;;  %vm357_vm12 = vcmp.gt.s32.totalorder %v692_v18, 6  ;;  %vm385_vm14 = vcmp.gt.s32.totalorder %v692_v18, 7 }
  0x93   :  { %v694_v23 = vpop.permute.xlu0 %98 }
  0x94   :  { %vm190_vm1 = vcmp.gt.s32.totalorder %v694_v23, 0  ;;  %vm218_vm3 = vcmp.gt.s32.totalorder %v694_v23, 1  ;;  %vm246_vm5 = vcmp.gt.s32.totalorder %v694_v23, 2  ;;  %vm274_vm7 = vcmp.gt.s32.totalorder %v694_v23, 3 }
  0x95   :  { %vm302_vm9 = vcmp.gt.s32.totalorder %v694_v23, 4  ;;  %vm330_vm11 = vcmp.gt.s32.totalorder %v694_v23, 5  ;;  %vm358_vm13 = vcmp.gt.s32.totalorder %v694_v23, 6  ;;  %vm386_vm15 = vcmp.gt.s32.totalorder %v694_v23, 7 }
  0xb3   :  { %v181_v16 = vpop.f32.mrf.mxu0 }
  0xb4   :  { %v182_v19 = vadd.f32 %v467_v17, %v181_v16 }
  0xb6   :  { %508 = vtanh.f32 %v182_v19 }
  0xbb   :  { %v183_v21 = vpop.f32.mrf.mxu0 }
  0xbc   :  { %v184_v22 = vadd.f32 %v468_v20, %v183_v21  ;;  %v509_v24 = vpop.eup %508 }
  0xbd   :  { %v191_v26 = vsel %vm189_vm0, %v509_v24, %v117_v12 }
  0xbe   :  { %510 = vtanh.f32 %v184_v22 }
  0xc4   :  { %v511_v25 = vpop.eup %510 }
  0xc5   :  { %v192_v27 = vsel %vm190_vm1, %v511_v25, %v118_v13  ;;  %v486_v13 = vld [vmem:[#allocation7 + $0x28] sm:$0xff]  }
  0xc6   :  { %v198_v28 = vpack.c.bf16 %v192_v27, %v191_v26  ;;  %v487_v15 = vunpack.c.l.bf16 %v486_v13  ;;  %v488_v17 = vunpack.c.h.bf16 %v486_v13 }
  0xc8   :  { %207 = vmatmul.bf16.vlgmr.msra.gmra.mxu1 %v198_v28 }
 0x145   :  { %v208_v30 = vpop.f32.mrf.mxu1 }
 0x146   :  { %v209_v32 = vadd.f32 %v471_v31, %v208_v30 }
 0x148   :  { %512 = vtanh.f32 %v209_v32 }
 0x14d   :  { %v210_v34 = vpop.f32.mrf.mxu1 }
 0x14e   :  { %v211_v35 = vadd.f32 %v472_v33, %v210_v34  ;;  %v513_v36 = vpop.eup %512 }
 0x14f   :  { %v219_v38 = vsel %vm217_vm2, %v513_v36, %v191_v26 }
 0x150   :  { %514 = vtanh.f32 %v211_v35 }
 0x156   :  { %v515_v37 = vpop.eup %514 }
 0x157   :  { %v220_v39 = vsel %vm218_vm3, %v515_v37, %v192_v27  ;;  %v490_v27 = vld [vmem:[#allocation7 + $0x30] sm:$0xff]  }
 0x158   :  { %v226_v40 = vpack.c.bf16 %v220_v39, %v219_v38  ;;  %v491_v29 = vunpack.c.l.bf16 %v490_v27  ;;  %v492_v31 = vunpack.c.h.bf16 %v490_v27 }
 0x15a   :  { %235 = vmatmul.bf16.vlgmr.msra.gmra.mxu2 %v226_v40 }
 0x1dd   :  { %v236_v42 = vpop.f32.mrf.mxu2 }
 0x1de   :  { %v237_v44 = vadd.f32 %v475_v43, %v236_v42 }
 0x1e0   :  { %516 = vtanh.f32 %v237_v44 }
 0x1e5   :  { %v238_v46 = vpop.f32.mrf.mxu2 }
 0x1e6   :  { %v239_v47 = vadd.f32 %v476_v45, %v238_v46  ;;  %v517_v48 = vpop.eup %516 }
 0x1e7   :  { %v247_v50 = vsel %vm245_vm4, %v517_v48, %v219_v38 }
 0x1e8   :  { %518 = vtanh.f32 %v239_v47 }
 0x1ee   :  { %v519_v49 = vpop.eup %518 }
 0x1ef   :  { %v248_v51 = vsel %vm246_vm5, %v519_v49, %v220_v39  ;;  %v494_v39 = vld [vmem:[#allocation7 + $0x38] sm:$0xff]  }
 0x1f0   :  { %v254_v52 = vpack.c.bf16 %v248_v51, %v247_v50  ;;  %v495_v40 = vunpack.c.l.bf16 %v494_v39  ;;  %v496_v43 = vunpack.c.h.bf16 %v494_v39 }
 0x1f2   :  { %263 = vmatmul.bf16.vlgmr.msra.gmra.mxu3 %v254_v52 }
 0x275   :  { %v264_v54 = vpop.f32.mrf.mxu3 }
 0x276   :  { %v265_v56 = vadd.f32 %v479_v55, %v264_v54 }
 0x278   :  { %520 = vtanh.f32 %v265_v56 }
 0x27d   :  { %v266_v58 = vpop.f32.mrf.mxu3 }
 0x27e   :  { %v267_v59 = vadd.f32 %v480_v57, %v266_v58  ;;  %v521_v60 = vpop.eup %520 }
 0x27f   :  { %v275_v62 = vsel %vm273_vm6, %v521_v60, %v247_v50 }
 0x280   :  { %522 = vtanh.f32 %v267_v59 }
 0x286   :  { %v523_v61 = vpop.eup %522 }
 0x287   :  { %v276_v63 = vsel %vm274_vm7, %v523_v61, %v248_v51 }
 0x288   :  { %v282_v0 = vpack.c.bf16 %v276_v63, %v275_v62 }
 0x28a   :  { %291 = vmatmul.bf16.vlgmr.msrb.gmra.mxu0 %v282_v0 }
 0x307   :  { %v292_v2 = vpop.f32.mrf.mxu0 }
 0x308   :  { %v293_v4 = vadd.f32 %v483_v3, %v292_v2 }
 0x30a   :  { %524 = vtanh.f32 %v293_v4 }
 0x30f   :  { %v294_v6 = vpop.f32.mrf.mxu0 }
 0x310   :  { %v295_v7 = vadd.f32 %v484_v5, %v294_v6  ;;  %v525_v8 = vpop.eup %524 }
 0x311   :  { %v303_v10 = vsel %vm301_vm8, %v525_v8, %v275_v62 }
 0x312   :  { %526 = vtanh.f32 %v295_v7 }
 0x318   :  { %v527_v9 = vpop.eup %526 }
 0x319   :  { %v304_v11 = vsel %vm302_vm9, %v527_v9, %v276_v63 }
 0x31a   :  { %v310_v12 = vpack.c.bf16 %v304_v11, %v303_v10 }
 0x31c   :  { %319 = vmatmul.bf16.vlgmr.msrb.gmra.mxu1 %v310_v12 }
 0x399   :  { %v320_v14 = vpop.f32.mrf.mxu1 }
 0x39a   :  { %v321_v16 = vadd.f32 %v487_v15, %v320_v14 }
 0x39c   :  { %528 = vtanh.f32 %v321_v16 }
 0x3a1   :  { %v322_v19 = vpop.f32.mrf.mxu1 }
 0x3a2   :  { %v323_v20 = vadd.f32 %v488_v17, %v322_v19  ;;  %v529_v21 = vpop.eup %528 }
 0x3a3   :  { %v331_v24 = vsel %vm329_vm10, %v529_v21, %v303_v10 }
 0x3a4   :  { %530 = vtanh.f32 %v323_v20 }
 0x3aa   :  { %v531_v22 = vpop.eup %530 }
 0x3ab   :  { %v332_v25 = vsel %vm330_vm11, %v531_v22, %v304_v11 }
 0x3ac   :  { %v338_v26 = vpack.c.bf16 %v332_v25, %v331_v24 }
 0x3ae   :  { %347 = vmatmul.bf16.vlgmr.msrb.gmra.mxu2 %v338_v26 }
 0x431   :  { %v348_v28 = vpop.f32.mrf.mxu2 }
 0x432   :  { %v349_v30 = vadd.f32 %v491_v29, %v348_v28 }
 0x434   :  { %532 = vtanh.f32 %v349_v30 }
 0x439   :  { %v350_v32 = vpop.f32.mrf.mxu2 }
 0x43a   :  { %v351_v33 = vadd.f32 %v492_v31, %v350_v32  ;;  %v533_v34 = vpop.eup %532 }
 0x43b   :  { %v359_v36 = vsel %vm357_vm12, %v533_v34, %v331_v24 }
 0x43c   :  { %534 = vtanh.f32 %v351_v33 }
 0x442   :  { %v535_v35 = vpop.eup %534 }
 0x443   :  { %v360_v37 = vsel %vm358_vm13, %v535_v35, %v332_v25 }
 0x444   :  { %v366_v38 = vpack.c.bf16 %v360_v37, %v359_v36 }
 0x446   :  { %375 = vmatmul.bf16.vlgmr.msrb.gmra.mxu3 %v366_v38 }
 0x4c9   :  { %v376_v41 = vpop.f32.mrf.mxu3 }
 0x4ca   :  { %v377_v42 = vadd.f32 %v495_v40, %v376_v41 }
 0x4cc   :  { %536 = vtanh.f32 %v377_v42 }
 0x4d1   :  { %v378_v44 = vpop.f32.mrf.mxu3 }
 0x4d2   :  { %v537_v45 = vpop.eup %536  ;;  %v379_v46 = vadd.f32 %v496_v43, %v378_v44 }
 0x4d3   :  { %v387_v47 = vsel %vm385_vm14, %v537_v45, %v359_v36 }
 0x4d4   :  { %389 = vst [vmem:[#allocation10] sm:$0xff] %v387_v47  ;;  %538 = vtanh.f32 %v379_v46 }
 0x4da   :  { %v539_v48 = vpop.eup %538 }
 0x4db   :  { %v388_v49 = vsel %vm386_vm15, %v539_v48, %v360_v37 }
 0x4dc   :  { %390 = vst [vmem:[#allocation10 + $0x8] sm:$0xff] %v388_v49 }
 0x4dd PF:  { %s397_s8 = sshll.u32 %s722_s4, 4  ;;  %s651_s9 = smov [#allocation10]   ;;  %s398_s8 = int_to_ptr.hbm [resolvable:$true] %s397_s8 }
 0x4de   :  { %s395_s10 = sshll.u32 %s651_s9, 4  ;;  %s396_s10 = int_to_ptr.vmem [resolvable:$true] %s395_s10 }
 0x4df   :  { %403 = dma.vmem_to_hbm [thread:$0]  %s396_s10, 256, %s398_s8, [#allocation6], %s646_s27, %s646_s27, %s647_s28  }
 0x4e0   :  { %640 = dma.done.wait [#allocation6], 256  }
 0x4e1   :  { %641 = vsyncadd [#allocation6], 4294967040 }
 0x4e2   :  { %408 = vsyncpa [#allocation5], 1 }
 0x4e3   :  { %409 = vsyncpa [#allocation8], 1 }
 0x4e4   :  { %410 = vsyncpa [#allocation6], 1 }

</bundles_post_ra>
